<compile_context>
chip_gen: v7x
topology: tpu7x:2x2x1
jax: 0.10.0
libtpu: 0.0.40
codegen_flags: <defaults>
</compile_context>

<pallas_src>
import functools

import jax
import jax.numpy as jnp
from jax import lax
from jax.experimental import pallas as pl
from jax.experimental.pallas import tpu as pltpu


# ---------------------------------------------------------------------------
# Helpers
# ---------------------------------------------------------------------------

def _round_up(v, m):
    return -(-v // m) * m


def _largest_divisor_le(n, cap):
    cap = int(max(1, min(n, cap)))
    for d in range(cap, 0, -1):
        if n % d == 0:
            return d
    return 1


def _sublane_tile(itemsize):
    # 8 rows for 4-byte, 16 for 2-byte (bf16), 32 for 1-byte dtypes.
    return max(8, 32 // max(1, itemsize))


def _padded_bytes(shape, itemsize):
    """VMEM footprint of a (..., a, b) buffer after (sublane, lane) padding."""
    *lead, a, b = shape
    n = 1
    for d in lead:
        n *= d
    return n * _round_up(a, _sublane_tile(itemsize)) * _round_up(b, 128) * itemsize


def _vmem_capacity_bytes():
    try:
        info = pltpu.get_tpu_info()
        cap = int(getattr(info, "vmem_capacity_bytes", 0) or 0)
        if cap > 0:
            return cap
    except Exception:
        pass
    return 64 * 1024 * 1024  # conservative: v7x per-TensorCore VMEM


def _pad_value(dtype):
    if jnp.issubdtype(dtype, jnp.floating):
        return float("-inf")
    return int(jnp.iinfo(dtype).min)


# ---------------------------------------------------------------------------
# Kernels
# ---------------------------------------------------------------------------

def _maxpool_nchw_kernel(x_ref, o_ref, hpad_ref, wpad_ref, *,
                         k, s, p, H, W, Hout, Wout, pad_val):
    """Max-pool a block of NCHW planes.

    x_ref:    (BP, H, W)          raw input planes (W on lanes, H on sublanes)
    o_ref:    (BP, Hout, Wout)
    hpad_ref: (BP, H + 2p, W)     scratch with the H halo
    wpad_ref: (BP, W + 2p, Hout)  scratch with the W halo (W on sublanes)
    """
    bp = x_ref.shape[0]
    dt = x_ref.dtype

    # ---- H halo (built in VMEM; no HBM pad pass) --------------------------
    if p > 0:
        halo = jnp.full((bp, p, W), pad_val, dt)
        hpad_ref[:, pl.ds(0, p), :] = halo
        hpad_ref[:, pl.ds(p + H, p), :] = halo
        hpad_ref[:, pl.ds(p, H), :] = x_ref[...]
    else:
        hpad_ref[...] = x_ref[...]

    # ---- Pass 1: rows (H axis, sublane-strided reads) ----------------------
    rmax = hpad_ref[:, pl.ds(0, Hout, stride=s), :]
    for r in range(1, k):
        rmax = jnp.maximum(rmax, hpad_ref[:, pl.ds(r, Hout, stride=s), :])
    # (BP, Hout, W)

    # ---- Put W on sublanes (XLU transpose), add W halo ---------------------
    rmax_t = jnp.swapaxes(rmax, 1, 2)                       # (BP, W, Hout)
    if p > 0:
        halo_w = jnp.full((bp, p, Hout), pad_val, dt)
        wpad_ref[:, pl.ds(0, p), :] = halo_w
        wpad_ref[:, pl.ds(p + W, p), :] = halo_w
        wpad_ref[:, pl.ds(p, W), :] = rmax_t
    else:
        wpad_ref[...] = rmax_t

    # ---- Pass 2: columns (W axis, sublane-strided reads) -------------------
    cmax_t = wpad_ref[:, pl.ds(0, Wout, stride=s), :]
    for c in range(1, k):
        cmax_t = jnp.maximum(cmax_t, wpad_ref[:, pl.ds(c, Wout, stride=s), :])
    # (BP, Wout, Hout) -> (BP, Hout, Wout)
    o_ref[...] = jnp.swapaxes(cmax_t, 1, 2)


def _maxpool_nhwc_kernel(x_ref, o_ref, pad_ref, rowmax_ref, *,
                         k, s, p, H, W, Hout, Wout, pad_val):
    """Max-pool a channels-last block.

    x_ref:      (BN, H, W, BC)
    o_ref:      (BN, Hout, Wout, BC)
    pad_ref:    (BN, Hp, Wp, BC)    scratch with the full -inf halo
    rowmax_ref: (BN, Hout, Wp, BC)  row-pass scratch
    """
    if p > 0:
        pad_ref[...] = jnp.full(pad_ref.shape, pad_val, pad_ref.dtype)
        pad_ref[:, pl.ds(p, H), pl.ds(p, W), :] = x_ref[...]
    else:
        pad_ref[...] = x_ref[...]

    # Pass 1: rows (H axis, untiled leading dim).
    rmax = pad_ref[:, pl.ds(0, Hout, stride=s), :, :]
    for r in range(1, k):
        rmax = jnp.maximum(rmax, pad_ref[:, pl.ds(r, Hout, stride=s), :, :])
    rowmax_ref[...] = rmax                                   # (BN, Hout, Wp, BC)

    # Pass 2: columns (W axis, sublane-strided reads).
    cmax = rowmax_ref[:, :, pl.ds(0, Wout, stride=s), :]
    for c in range(1, k):
        cmax = jnp.maximum(cmax, rowmax_ref[:, :, pl.ds(c, Wout, stride=s), :])
    o_ref[...] = cmax                                        # (BN, Hout, Wout, BC)


# ---------------------------------------------------------------------------
# Wrappers
# ---------------------------------------------------------------------------

def _pool_nchw(x, k, s, p):
    N, C, H, W = x.shape
    Hout = (H + 2 * p - k) // s + 1
    Wout = (W + 2 * p - k) // s + 1
    Hp, Wp = H + 2 * p, W + 2 * p
    P = N * C
    pad_val = _pad_value(x.dtype)
    itemsize = x.dtype.itemsize

    def step_bytes(bp):
        # double-buffered in/out blocks + halo scratches + transient values
        return (2 * _padded_bytes((bp, H, W), itemsize)
                + 2 * _padded_bytes((bp, Hout, Wout), itemsize)
                + _padded_bytes((bp, Hp, W), itemsize)
                + _padded_bytes((bp, Wp, Hout), itemsize)
                + _padded_bytes((bp, Hout, W), itemsize)
                + _padded_bytes((bp, W, Hout), itemsize)
                + _padded_bytes((bp, Wout, Hout), itemsize))

    cap = _vmem_capacity_bytes()
    budget = max(8 << 20, min(32 << 20, cap // 4))

    per_plane = max(1, step_bytes(1))
    cap_units = max(1, budget // per_plane)
    # >=2 grid steps for the two v7x TensorCores, ~4 so the pipeline can
    # overlap input DMA of step i+1 with output writeback of step i-1.
    target_steps = min(P, 4)
    cap_units = min(cap_units, max(1, P // target_steps))
    block_p = _largest_divisor_le(P, cap_units)

    need = step_bytes(block_p)
    vmem_limit = int(min(cap * 3 // 4, max(32 << 20, need + (4 << 20))))

    kern = functools.partial(_maxpool_nchw_kernel, k=k, s=s, p=p, H=H, W=W,
                             Hout=Hout, Wout=Wout, pad_val=pad_val)

    pooled = pl.pallas_call(
        kern,
        out_shape=jax.ShapeDtypeStruct((P, Hout, Wout), x.dtype),
        grid=(P // block_p,),
        in_specs=[pl.BlockSpec((block_p, H, W), lambda i: (i, 0, 0))],
        out_specs=pl.BlockSpec((block_p, Hout, Wout), lambda i: (i, 0, 0)),
        scratch_shapes=[pltpu.VMEM((block_p, Hp, W), x.dtype),
                        pltpu.VMEM((block_p, Wp, Hout), x.dtype)],
        compiler_params=pltpu.CompilerParams(
            dimension_semantics=("parallel",),
            vmem_limit_bytes=vmem_limit),
    )(x.reshape(P, H, W))                                    # reshape is free (NCHW is contiguous)
    return pooled.reshape(N, C, Hout, Wout)


def _pool_nhwc(x, k, s, p):
    N, H, W, C = x.shape
    Hout = (H + 2 * p - k) // s + 1
    Wout = (W + 2 * p - k) // s + 1
    Hp, Wp = H + 2 * p, W + 2 * p
    pad_val = _pad_value(x.dtype)
    itemsize = x.dtype.itemsize

    def step_bytes(bn, bc):
        return (2 * _padded_bytes((bn, H, W, bc), itemsize)
                + 2 * _padded_bytes((bn, Hout, Wout, bc), itemsize)
                + _padded_bytes((bn, Hp, Wp, bc), itemsize)
                + _padded_bytes((bn, Hout, Wp, bc), itemsize)
                + _padded_bytes((bn, Hout, Wout, bc), itemsize))

    cap = _vmem_capacity_bytes()
    budget = max(8 << 20, min(32 << 20, cap // 4))

    # Keep the contiguous channel (lane) dim whole whenever possible; split the
    # leading batch dim first, and only block C in 128-lane multiples.
    if C % 128 != 0 or step_bytes(1, C) <= budget:
        block_c = C
    else:
        per_128 = max(1, step_bytes(1, 128))
        block_c = 128 * _largest_divisor_le(C // 128, max(1, budget // per_128))
    cap_n = max(1, budget // max(1, step_bytes(1, block_c)))
    block_n = _largest_divisor_le(N, cap_n)

    # >=2 grid steps so both v7x TensorCores get work.
    if (N // block_n) * (C // block_c) < 2:
        if N > 1:
            block_n = _largest_divisor_le(N, max(1, N // 2))
        elif C % 256 == 0 and block_c == C:
            block_c = C // 2

    need = step_bytes(block_n, block_c)
    vmem_limit = int(min(cap * 3 // 4, max(32 << 20, need + (4 << 20))))

    kern = functools.partial(_maxpool_nhwc_kernel, k=k, s=s, p=p, H=H, W=W,
                             Hout=Hout, Wout=Wout, pad_val=pad_val)

    return pl.pallas_call(
        kern,
        out_shape=jax.ShapeDtypeStruct((N, Hout, Wout, C), x.dtype),
        grid=(N // block_n, C // block_c),
        in_specs=[pl.BlockSpec((block_n, H, W, block_c),
                               lambda i, j: (i, 0, 0, j))],
        out_specs=pl.BlockSpec((block_n, Hout, Wout, block_c),
                               lambda i, j: (i, 0, 0, j)),
        scratch_shapes=[pltpu.VMEM((block_n, Hp, Wp, block_c), x.dtype),
                        pltpu.VMEM((block_n, Hout, Wp, block_c), x.dtype)],
        compiler_params=pltpu.CompilerParams(
            dimension_semantics=("parallel", "parallel"),
            vmem_limit_bytes=vmem_limit),
    )(x)


def boundary_function_pooling_2d(x, mask=None, *, kernel_size=3, stride=2,
                                 padding=1, data_format="NCHW"):
    """JAX/Pallas equivalent of BoundaryfunctionPooling2d.forward.

    x:    (N, C, H, W) by default (NCHW, like PyTorch), or (N, H, W, C) with
          data_format="NHWC".
    mask: optional; in the reference module the final blend
          fg*pm + (1-fg)*pm is an exact identity, so the output is always
          maxpool(x) and the mask is intentionally unused here.
          (A NaN/inf-valued mask would propagate in PyTorch but not here.)
    """
    del mask
    k, s, p = kernel_size, stride, padding
    assert 0 <= p < k, "padding must satisfy 0 <= padding < kernel_size"
    if data_format == "NCHW":
        return _pool_nchw(x, k, s, p)
    if data_format == "NHWC":
        return _pool_nhwc(x, k, s, p)
    raise ValueError(f"unsupported data_format: {data_format!r}")


# ---------------------------------------------------------------------------
# Demo / self-check
# ---------------------------------------------------------------------------

if __name__ == "__main__":
    key = jax.random.PRNGKey(0)
    kx, km = jax.random.split(key)

    # Small shapes consistent with the module (NCHW input, low-res binary mask).
    x = jax.random.normal(kx, (2, 4, 16, 16), dtype=jnp.float32)
    mask = (jax.random.uniform(km, (2, 1, 4, 4)) > 0.5).astype(jnp.float32)

    # Default NCHW-native path (no transposes, no HBM pad pass).
    out = boundary_function_pooling_2d(x, mask)
    out = jax.block_until_ready(out)

    # Reference: MaxPool2d(3, 2, 1) == reduce_window with -inf padding.
    ref = lax.reduce_window(
        x, -jnp.inf, lax.max,
        window_dimensions=(1, 1, 3, 3),
        window_strides=(1, 1, 2, 2),
        padding=((0, 0), (0, 0), (1, 1), (1, 1)),
    )
    assert out.shape == (2, 4, 8, 8), out.shape
    assert jnp.allclose(out, ref), "NCHW path mismatch vs reduce_window"

    # Channels-last entry point (for callers already holding NHWC data).
    x_nhwc = jnp.transpose(x, (0, 2, 3, 1))
    out_nhwc = boundary_function_pooling_2d(x_nhwc, data_format="NHWC")
    out_nhwc = jax.block_until_ready(out_nhwc)
    assert out_nhwc.shape == (2, 8, 8, 4), out_nhwc.shape
    assert jnp.allclose(out_nhwc, jnp.transpose(ref, (0, 2, 3, 1))), \
        "NHWC path mismatch vs reduce_window"

    print("KERNEL_OK")
</pallas_src>

<mosaic_0001>
module attributes {stable_mosaic.version = 11 : i64} {
  func.func @_maxpool_nchw_kernel(%arg0: i32, %arg1: memref<2x16x16xf32, #tpu.memory_space<vmem>>, %arg2: memref<2x8x8xf32, #tpu.memory_space<vmem>>, %arg3: memref<2x18x16xf32, #tpu.memory_space<vmem>>, %arg4: memref<2x18x8xf32, #tpu.memory_space<vmem>>) attributes {dimension_semantics = [#tpu.dimension_semantics<parallel>], iteration_bounds = array<i64: 4>, scalar_prefetch = 0 : i64, scratch_operands = 2 : i64, tpu.core_type = #tpu.core_type<tc>, window_params = [{transform_indices = @transform_0, window_bounds = array<i64: 2, 16, 16>}, {transform_indices = @transform_1, window_bounds = array<i64: 2, 8, 8>}]} {
    %cst = arith.constant 0xFF800000 : f32
    %0 = vector.broadcast %cst : f32 to vector<2x1x16xf32>
    %c0 = arith.constant 0 : index
    %c0_0 = arith.constant 0 : index
    %c0_1 = arith.constant 0 : index
    %1 = vector.load %arg3[%c0, %c0_0, %c0_1] : memref<2x18x16xf32, #tpu.memory_space<vmem>>, vector<2x1x16xf32>
    tpu.vector_store %arg3[%c0, %c0_0, %c0_1], %0 {strides = array<i32>} : memref<2x18x16xf32, #tpu.memory_space<vmem>>, vector<2x1x16xf32>,
    %c0_2 = arith.constant 0 : index
    %c17 = arith.constant 17 : index
    %c0_3 = arith.constant 0 : index
    %2 = vector.load %arg3[%c0_2, %c17, %c0_3] : memref<2x18x16xf32, #tpu.memory_space<vmem>>, vector<2x1x16xf32>
    tpu.vector_store %arg3[%c0_2, %c17, %c0_3], %0 {strides = array<i32>} : memref<2x18x16xf32, #tpu.memory_space<vmem>>, vector<2x1x16xf32>,
    %c0_4 = arith.constant 0 : index
    %c0_5 = arith.constant 0 : index
    %c0_6 = arith.constant 0 : index
    %3 = vector.load %arg1[%c0_4, %c0_5, %c0_6] : memref<2x16x16xf32, #tpu.memory_space<vmem>>, vector<2x16x16xf32>
    %c0_7 = arith.constant 0 : index
    %c1 = arith.constant 1 : index
    %c0_8 = arith.constant 0 : index
    %4 = vector.load %arg3[%c0_7, %c1, %c0_8] : memref<2x18x16xf32, #tpu.memory_space<vmem>>, vector<2x16x16xf32>
    tpu.vector_store %arg3[%c0_7, %c1, %c0_8], %3 {strides = array<i32>} : memref<2x18x16xf32, #tpu.memory_space<vmem>>, vector<2x16x16xf32>,
    %c0_9 = arith.constant 0 : index
    %c0_10 = arith.constant 0 : index
    %c0_11 = arith.constant 0 : index
    %5 = tpu.strided_load %arg3[%c0_9, %c0_10, %c0_11] {strides = array<i32: 1, 2, 1>} : memref<2x18x16xf32, #tpu.memory_space<vmem>>, vector<2x8x16xf32>
    %c0_12 = arith.constant 0 : index
    %c1_13 = arith.constant 1 : index
    %c0_14 = arith.constant 0 : index
    %6 = tpu.strided_load %arg3[%c0_12, %c1_13, %c0_14] {strides = array<i32: 1, 2, 1>} : memref<2x18x16xf32, #tpu.memory_space<vmem>>, vector<2x8x16xf32>
    %7 = arith.maximumf %5, %6 : vector<2x8x16xf32>
    %c0_15 = arith.constant 0 : index
    %c2 = arith.constant 2 : index
    %c0_16 = arith.constant 0 : index
    %8 = tpu.strided_load %arg3[%c0_15, %c2, %c0_16] {strides = array<i32: 1, 2, 1>} : memref<2x18x16xf32, #tpu.memory_space<vmem>>, vector<2x8x16xf32>
    %9 = arith.maximumf %7, %8 : vector<2x8x16xf32>
    %10 = tpu.transpose %9, [0, 2, 1] : vector<2x8x16xf32> -> vector<2x16x8xf32>
    %cst_17 = arith.constant 0xFF800000 : f32
    %11 = vector.broadcast %cst_17 : f32 to vector<2x1x8xf32>
    %c0_18 = arith.constant 0 : index
    %c0_19 = arith.constant 0 : index
    %c0_20 = arith.constant 0 : index
    %12 = vector.load %arg4[%c0_18, %c0_19, %c0_20] : memref<2x18x8xf32, #tpu.memory_space<vmem>>, vector<2x1x8xf32>
    tpu.vector_store %arg4[%c0_18, %c0_19, %c0_20], %11 {strides = array<i32>} : memref<2x18x8xf32, #tpu.memory_space<vmem>>, vector<2x1x8xf32>,
    %c0_21 = arith.constant 0 : index
    %c17_22 = arith.constant 17 : index
    %c0_23 = arith.constant 0 : index
    %13 = vector.load %arg4[%c0_21, %c17_22, %c0_23] : memref<2x18x8xf32, #tpu.memory_space<vmem>>, vector<2x1x8xf32>
    tpu.vector_store %arg4[%c0_21, %c17_22, %c0_23], %11 {strides = array<i32>} : memref<2x18x8xf32, #tpu.memory_space<vmem>>, vector<2x1x8xf32>,
    %c0_24 = arith.constant 0 : index
    %c1_25 = arith.constant 1 : index
    %c0_26 = arith.constant 0 : index
    %14 = vector.load %arg4[%c0_24, %c1_25, %c0_26] : memref<2x18x8xf32, #tpu.memory_space<vmem>>, vector<2x16x8xf32>
    tpu.vector_store %arg4[%c0_24, %c1_25, %c0_26], %10 {strides = array<i32>} : memref<2x18x8xf32, #tpu.memory_space<vmem>>, vector<2x16x8xf32>,
    %c0_27 = arith.constant 0 : index
    %c0_28 = arith.constant 0 : index
    %c0_29 = arith.constant 0 : index
    %15 = tpu.strided_load %arg4[%c0_27, %c0_28, %c0_29] {strides = array<i32: 1, 2, 1>} : memref<2x18x8xf32, #tpu.memory_space<vmem>>, vector<2x8x8xf32>
    %c0_30 = arith.constant 0 : index
    %c1_31 = arith.constant 1 : index
    %c0_32 = arith.constant 0 : index
    %16 = tpu.strided_load %arg4[%c0_30, %c1_31, %c0_32] {strides = array<i32: 1, 2, 1>} : memref<2x18x8xf32, #tpu.memory_space<vmem>>, vector<2x8x8xf32>
    %17 = arith.maximumf %15, %16 : vector<2x8x8xf32>
    %c0_33 = arith.constant 0 : index
    %c2_34 = arith.constant 2 : index
    %c0_35 = arith.constant 0 : index
    %18 = tpu.strided_load %arg4[%c0_33, %c2_34, %c0_35] {strides = array<i32: 1, 2, 1>} : memref<2x18x8xf32, #tpu.memory_space<vmem>>, vector<2x8x8xf32>
    %19 = arith.maximumf %17, %18 : vector<2x8x8xf32>
    %20 = tpu.transpose %19, [0, 2, 1] : vector<2x8x8xf32> -> vector<2x8x8xf32>
    %c0_36 = arith.constant 0 : index
    %c0_37 = arith.constant 0 : index
    %c0_38 = arith.constant 0 : index
    %21 = vector.load %arg2[%c0_36, %c0_37, %c0_38] : memref<2x8x8xf32, #tpu.memory_space<vmem>>, vector<2x8x8xf32>
    tpu.vector_store %arg2[%c0_36, %c0_37, %c0_38], %20 {strides = array<i32>} : memref<2x8x8xf32, #tpu.memory_space<vmem>>, vector<2x8x8xf32>,
    return
  }
  func.func @transform_0(%arg0: i32) -> (i32, i32, i32) {
    %c0_i32 = arith.constant 0 : i32
    %c0_i32_0 = arith.constant 0 : i32
    %c0_i32_1 = arith.constant 0 : i32
    return %arg0, %c0_i32, %c0_i32_0 : i32, i32, i32
  }
  func.func @transform_1(%arg0: i32) -> (i32, i32, i32) {
    %c0_i32 = arith.constant 0 : i32
    %c0_i32_0 = arith.constant 0 : i32
    %c0_i32_1 = arith.constant 0 : i32
    return %arg0, %c0_i32, %c0_i32_0 : i32, i32, i32
  }
}

</mosaic_0001>

<bundles_post_ra>
// kernel: tpu_custom_call.1
= control target key start
LH: loop header
LB: loop body
LE: loop exit
PB: predicated region body
PF: predicated region fallthrough
CT: control target
= control target key end

     0   :  { %6 = vsyncpa [#allocation5], 0  ;;  %s761_s0 = inlined_call_operand.hbm [shape: f32[8,16,16], index: 0, kind: input, shape index: {}]   ;;  %s762_s1 = inlined_call_operand.hbm [shape: f32[8,8,8], index: 1, kind: output, shape index: {}]  }
   0x1   :  { %8 = vsyncpa [#allocation5 + $0x1], 0 }
   0x2   :  { %9 = vsyncpa [#allocation6], 0 }
   0x3   :  { %11 = vsyncpa [#allocation6 + $0x1], 0  ;;  %s594_s6 = smov 0   ;;  %s596_s7 = smov 0  }
   0x4   :  { %s598_s8 = smov 0   ;;  %s600_s9 = smov 0  }
   0x5 LB: > { %s615_s10 = sadd.s32 4294967295, %s575_s9   ;;  %s409_s11 = sadd.s32 4294967294, %s575_s9   ;;  %s575_s9 = sphi %s600_s9, %s774_s9   ;;  %s571_s8 = sphi %s598_s8, %s773_s8   ;;  %s567_s7 = sphi %s596_s7, %s772_s7   ;;  %s563_s6 = sphi %s594_s6, %s771_s6  }
   0x6   : > { %s619_s12 = sadd.s32 1, %s575_s9   ;;  %s24_s13 = sadd.s32 1, %s571_s8 }
   0x7   : > { %s21_s14 = ssub.s32 %s575_s9, %s619_s12  ;;  %p31_p0 = scmp.ne.s32.totalorder %s571_s8, %s567_s7 }
   0x8   : > { %p22_p1 = scmp.eq.s32.totalorder %s21_s14, 0  ;;  %p32_p2 = scmp.eq.s32.totalorder %s575_s9, 0 }
   0x9   : > { %p37_p3 = scmp.ne.s32.totalorder %s567_s7, %s563_s6  ;;  %p38_p4 = scmp.eq.s32.totalorder %s615_s10, 0 }
   0xa   : > { %s631_s15 = scalar_select %p22_p1, %s571_s8, %s24_s13  }
   0xb   : > { %p633_p5 = por %p32_p2, %p31_p0  ;;  %p637_p6 = por %p38_p4, %p37_p3 }
   0xc   : > { %p61_p7 = scmp.eq.s32.totalorder %s615_s10, 3  ;;  %p67_p8 = scmp.eq.s32.totalorder %s409_s11, 3 }
   0xd   : > { %p439_p9 = scmp.lt.s32.totalorder %s575_s9, 4  ;;  %s87_s20 = sand.u32 1, %s571_s8  }
   0xe   : > { %p643_p10 = por %p61_p7, %p31_p0  ;;  %p647_p11 = por %p67_p8, %p37_p3 }
   0xf   : > { %s425_s21 = sshll.u32 %s575_s9, 9  ;;  %s412_s22 = sshll.u32 %s87_s20, 5 }
  0x10   : > { %s766_s18 = scalar_select %p643_p10, 1, 0 }
  0x11   : > { %s767_s19 = scalar_select %p647_p11, 1, 0 }
  0x12   : > { %s656_s25 = scalar_lea.hbm %s761_s0, %s425_s21  ;;  %s91_s26 = scalar_lea.vmem [#allocation4], %s412_s22 }
  0x13   : > { %s99_s27 = sshll.u32 %s91_s26, 4  ;;  %p660_p12 = pnand %p439_p9, %p633_p5  ;;  %s664_s27 = int_to_ptr.vmem [resolvable:$true] %s99_s27 }
  0x14   : > { %s666_s29 = scalar_lea.sflag [#allocation5], %s87_s20  ;;  %s479_s30 = scalar_lea.hbm %s656_s25, 512 }
  0x15   : > { %p480_p13 = scmp.ne.s32.totalorder %s656_s25, %s479_s30  ;;  %p481_p0 = pneg %p660_p12 }
  0x16   : > { %s484_s4 = scalar_lea.hbm %s761_s0, 2048  ;;  %p485_p3 = scmp.lt.u32.totalorder %s656_s25, %s761_s0 }
  0x17   : > { %p482_p1 = pnand %p481_p0, %p480_p13  ;;  %p486_p4 = scmp.lt.u32.totalorder %s484_s4, %s479_s30 }
  0x18   : > { %p488_p7 = scmp.lt.u32.totalorder %s479_s30, %s656_s25 }
  0x19   : > { %p483_p2 = pneg %p482_p1  ;;  %p487_p5 = por %p486_p4, %p485_p3 }
  0x1b   : > { %p489_p8 = por %p488_p7, %p487_p5 }
  0x1d   : > { %p490_p9 = pnand %p489_p8, %p483_p2 }
  0x1f   : > { %493 = shalt.err (!%p490_p9)
}
  0x20   : > { %s494_s13 = scalar_lea.vmem %s664_s27, 512  ;;  %s577_s14 = smov [#allocation4]  }
  0x21   : > { %p495_p13 = scmp.ne.s32.totalorder %s664_s27, %s494_s13  ;;  %s499_s16 = sshll.u32 %s577_s14, 4  ;;  %s500_s16 = int_to_ptr.vmem [resolvable:$false] %s499_s16 }
  0x22   : > { %s501_s20 = scalar_lea.vmem %s500_s16, 1024  ;;  %p502_p10 = scmp.lt.s32.totalorder %s664_s27, %s500_s16 }
  0x23   : > { %p497_p1 = pnand %p495_p13, %p481_p0  ;;  %p503_p3 = scmp.lt.s32.totalorder %s501_s20, %s494_s13 }
  0x25   : > { %p498_p11 = pneg %p497_p1  ;;  %p504_p4 = por %p503_p3, %p502_p10 }
  0x27   : > { %p505_p5 = pnand %p504_p4, %p498_p11 }
  0x29   : > { %508 = shalt.err (!%p505_p5)
}
  0x2a   : > { %s578_s21 = smov 128   ;;  %s579_s22 = smov 8  }
  0x2b   : > { %434 = dma.hbm_to_vmem [thread:$0]  (!%p660_p12), %s656_s25, 512, %s664_s27, %s666_s29, %s578_s21, %s578_s21, %s579_s22  }
  0x2c   : > { %p416_p0 = scmp.ge.s32.totalorder %s575_s9, 1  ;;  %p107_p2 = scmp.lt.s32.totalorder %s575_s9, 5 }
  0x2e   : > { %p108_p7 = pnand %p416_p0, %p107_p2 }
  0x2f   : > { %s697_s23 = sand.u32 (!%p108_p7), 1, %s567_s7  }
  0x30   : > { %111 = sbr.rel (%p108_p7) target bundleno = 367 (0x16f), region = 24  ;;  %s417_s24 = sshll.u32 (!%p108_p7), %s697_s23, 5 }
  0x31   : > { %s114_s26 = scalar_lea.sflag (!%p108_p7), [#allocation5], %s697_s23  ;;  %s117_s30 = scalar_lea.vmem (!%p108_p7), [#allocation4], %s417_s24 }
  0x37   : > { %554 = dma.done.wait (%p637_p6), %s114_s26, 512  }
  0x38   : > { %556 = vsyncadd (%p637_p6), %s114_s26, 4294966784  ;;  %vm138_vm0 = vcmask 122880   ;;  %v580_v0 = vmov -inf   ;;  %vm147_vm1 = vcmask 130048   ;;  %v143_v1 = vld [vmem:[%s117_s30] sm:$0xff]  ;;  %v144_v2 = vld [vmem:[%s117_s30 + $0x8] sm:$0xff] }
  0x39   : > { %139 = vst.msk [vmem:[#allocation2] sm:$0x1] %vm138_vm0, %v580_v0  ;;  %140 = vst.msk [vmem:[#allocation2 + $0x18] sm:$0x1] %vm138_vm0, %v580_v0  ;;  %v145_v3 = vld [vmem:[%s117_s30 + $0x10] sm:$0xff]  ;;  %v146_v4 = vld [vmem:[%s117_s30 + $0x18] sm:$0xff] }
  0x3a   : > { %148 = vst.msk [vmem:[#allocation2 + $0x1] sm:$0xff] %vm147_vm1, %v143_v1  ;;  %149 = vst.msk [vmem:[#allocation2 + $0x9] sm:$0xff] %vm147_vm1, %v144_v2  ;;  %vm231_vm2 = vcmask 57344   ;;  %vm236_vm3 = vcmask 64512   ;;  %s418_s17 = sshll.u32 %s697_s23, 4  ;;  %s426_s28 = sshll.u32 %s615_s10, 8 }
  0x3b   : > { %150 = vst.msk [vmem:[#allocation2 + $0x19] sm:$0xff] %vm147_vm1, %v145_v3  ;;  %151 = vst.msk [vmem:[#allocation2 + $0x21] sm:$0xff] %vm147_vm1, %v146_v4  ;;  %s135_s25 = scalar_lea.vmem [#allocation7], %s418_s17  ;;  %s717_s3 = scalar_lea.hbm %s762_s1, %s426_s28 }
  0x3c   : > { %232 = vst.msk [vmem:[#allocation3] sm:$0x1] %vm231_vm2, %v580_v0  ;;  %233 = vst.msk [vmem:[#allocation3 + $0x18] sm:$0x1] %vm231_vm2, %v580_v0  ;;  %s336_s27 = sshll.u32 %s135_s25, 4  ;;  %s323_s4 = scalar_lea.sflag [#allocation6], %s697_s23  ;;  %s712_s27 = int_to_ptr.vmem [resolvable:$true] %s336_s27 }
  0x3d   : > { %s509_s5 = scalar_lea.vmem %s712_s27, 256  ;;  %p769_p10 = scmp.ne.s32.totalorder %s766_s18, 0 }
  0x3e   : > { %p510_p6 = scmp.ne.s32.totalorder %s712_s27, %s509_s5  ;;  %s581_s10 = smov [#allocation7]  }
  0x3f   : > { %s513_s11 = sshll.u32 %s581_s10, 4  ;;  %s514_s11 = int_to_ptr.vmem [resolvable:$false] %s513_s11 }
  0x40   : > { %p511_p11 = pnand %p510_p6, %p769_p10  ;;  %s515_s13 = scalar_lea.vmem %s514_s11, 512 }
  0x41   : > { %v152_v5 = vld [vmem:[#allocation2] ss:$2 sm:$0xff]  ;;  %v156_v6 = vld [vmem:[#allocation2 + $0x1] ss:$2 sm:$0xff]  ;;  %p516_p8 = scmp.lt.s32.totalorder %s712_s27, %s514_s11  ;;  %p517_p9 = scmp.lt.s32.totalorder %s515_s13, %s509_s5 }
  0x42   : > { %v162_v7 = vld [vmem:[#allocation2 + $0x2] ss:$2 sm:$0xff]  ;;  %v159_v8 = vmax.f32 %v152_v5, %v156_v6  ;;  %v158_v10 = vld [vmem:[#allocation2 + $0x19] ss:$2 sm:$0xff]  ;;  %p512_p12 = pneg %p511_p11 }
  0x43   : > { %v154_v9 = vld [vmem:[#allocation2 + $0x18] ss:$2 sm:$0xff]  ;;  %p518_p13 = por %p517_p9, %p516_p8 }
  0x44   : > { %v160_v11 = vmax.f32 %v154_v9, %v158_v10  ;;  %v165_v12 = vmax.f32 %v159_v8, %v162_v7  ;;  %v164_v13 = vld [vmem:[#allocation2 + $0x1a] ss:$2 sm:$0xff] }
  0x45   : > { %p519_p1 = pnand %p518_p13, %p512_p12 }
  0x46   : > { %167 = vxpose.xlu0.b32.start.end [1/1] (short) (narrow) %v165_v12, 16  ;;  %v166_v14 = vmax.f32 %v160_v11, %v164_v13 }
  0x4b   : > { %199 = vxpose.xlu0.b32.start.end [1/1] (short) (narrow) %v166_v14, 16 }
  0xc6   : > { %v183_v15 = vpop.trf.xlu0 }
  0xc7   : > { %237 = vst.msk [vmem:[#allocation3 + $0x1] sm:$0xff] %vm236_vm3, %v183_v15 }
  0xca   : > { %v184_v16 = vpop.trf.xlu0 }
  0xcb   : > { %238 = vst.msk [vmem:[#allocation3 + $0x9] sm:$0xff] %vm236_vm3, %v184_v16 }
  0xce   : > { %v215_v17 = vpop.trf.xlu0 }
  0xcf   : > { %239 = vst.msk [vmem:[#allocation3 + $0x19] sm:$0xff] %vm236_vm3, %v215_v17 }
  0xd2   : > { %v216_v18 = vpop.trf.xlu0  ;;  %v241_v19 = vld [vmem:[#allocation3] ss:$2 sm:$0xff]  ;;  %v245_v20 = vld [vmem:[#allocation3 + $0x1] ss:$2 sm:$0xff] }
  0xd3   : > { %240 = vst.msk [vmem:[#allocation3 + $0x21] sm:$0xff] %vm236_vm3, %v216_v18  ;;  %v248_v21 = vmax.f32 %v241_v19, %v245_v20  ;;  %v251_v22 = vld [vmem:[#allocation3 + $0x2] ss:$2 sm:$0xff] }
  0xd5   : > { %v254_v23 = vmax.f32 %v248_v21, %v251_v22 }
  0xd7   : > { %256 = vxpose.xlu1.b32.start.end [1/1] (short) (narrow) %v254_v23, 8 }
  0xda   : > { %v243_v24 = vld [vmem:[#allocation3 + $0x18] ss:$2 sm:$0xff]  ;;  %v247_v25 = vld [vmem:[#allocation3 + $0x19] ss:$2 sm:$0xff] }
  0xdb   : > { %v249_v26 = vmax.f32 %v243_v24, %v247_v25  ;;  %v253_v27 = vld [vmem:[#allocation3 + $0x1a] ss:$2 sm:$0xff] }
  0xdd   : > { %v255_v28 = vmax.f32 %v249_v26, %v253_v27 }
  0xdf   : > { %288 = vxpose.xlu1.b32.start.end [1/1] (short) (narrow) %v255_v28, 8 }
 0x157   : > { %v272_v29 = vpop.trf.xlu1 }
 0x158   : > { %320 = vst.msk [vmem:[%s135_s25] sm:$0xff] %vm236_vm3, %v272_v29 }
 0x15f   : > { %v304_v30 = vpop.trf.xlu1 }
 0x160   : > { %321 = vst.msk [vmem:[%s135_s25 + $0x8] sm:$0xff] %vm236_vm3, %v304_v30 }
 0x161   : > { %522 = shalt.err (!%p519_p1)
}
 0x162   : > { %s523_s14 = scalar_lea.hbm %s717_s3, 256  ;;  %s527_s21 = scalar_lea.hbm %s762_s1, 1024 }
 0x163   : > { %p524_p3 = scmp.ne.s32.totalorder %s717_s3, %s523_s14  ;;  %p528_p0 = scmp.lt.u32.totalorder %s717_s3, %s762_s1 }
 0x164   : > { %p529_p2 = scmp.lt.u32.totalorder %s527_s21, %s523_s14  ;;  %p531_p6 = scmp.lt.u32.totalorder %s523_s14, %s717_s3 }
 0x165   : > { %p525_p4 = pnand %p524_p3, %p769_p10 }
 0x166   : > { %p530_p7 = por %p529_p2, %p528_p0 }
 0x167   : > { %p526_p5 = pneg %p525_p4 }
 0x168   : > { %p532_p11 = por %p531_p6, %p530_p7 }
 0x16a   : > { %p533_p12 = pnand %p532_p11, %p526_p5 }
 0x16c   : > { %536 = shalt.err (!%p533_p12)
}
 0x16d   : > { %s582_s26 = smov 128   ;;  %s583_s30 = smov 8  }
 0x16e   : > { %429 = dma.vmem_to_hbm [thread:$0]  (%p769_p10), %s712_s27, 256, %s717_s3, %s323_s4, %s582_s26, %s582_s26, %s583_s30  }
 0x16f PF: > { %p440_p8 = scmp.ge.s32.totalorder %s575_s9, 2  ;;  %s351_s17 = sand.u32 1, %s563_s6  }
 0x170   : > { %p770_p9 = scmp.ne.s32.totalorder %s767_s19, 0  ;;  %s352_s25 = scalar_lea.sflag [#allocation6], %s351_s17 }
 0x172   : > { %p436_p13 = pnand %p440_p8, %p770_p9 }
 0x174   : > { %558 = dma.done.wait (!%p436_p13), %s352_s25, 256  }
 0x175   : > { %560 = vsyncadd (!%p436_p13), %s352_s25, 4294967040  ;;  %p14_p1 = scmp.ge.s32.totalorder %s619_s12, 6   ;;  %s771_s6 = smov %s567_s7 }
 0x176   : > { %s772_s7 = smov %s571_s8  ;;  %s773_s8 = smov %s631_s15 }
 0x177   : > { %s774_s9 = smov %s619_s12  ;;  %16 = sbr.rel (!%p14_p1) target bundleno = 5 (0x5), region = 79 }
 0x17e   :  { %357 = vsyncpa [#allocation5], 1 }
 0x17f   :  { %359 = vsyncpa [#allocation5 + $0x1], 1 }
 0x180   :  { %360 = vsyncpa [#allocation6], 1 }
 0x181   :  { %362 = vsyncpa [#allocation6 + $0x1], 1 }

</bundles_post_ra>
